<compile_context>
chip_gen: v5e
topology: v5e:2x2
jax: 0.10.0
libtpu: 0.0.40
codegen_flags: <defaults>
</compile_context>

<pallas_src>
import math

import jax
import jax.numpy as jnp
from jax.experimental import pallas as pl
from jax.experimental.pallas import tpu as pltpu

EPS = 1e-5


def _round_up(a, m):
    return ((a + m - 1) // m) * m


# ---------------------------------------------------------------------------
# Pass A: accumulate fc1-output statistics (sum and second-moment matrix)
# across batch tiles.  Outputs use a constant index_map -> resident
# accumulators across the grid (init at step 0, written back once at the end).
# ---------------------------------------------------------------------------
def _stats_kernel(x_ref, w1_ref, sum_ref, m2_ref):
    @pl.when(pl.program_id(0) == 0)
    def _init():
        sum_ref[...] = jnp.zeros_like(sum_ref)
        m2_ref[...] = jnp.zeros_like(m2_ref)

    # h1 = W1 @ x_tile^T  -> (16, TB): features on sublanes, batch on lanes.
    # fc1 bias is intentionally omitted: it cancels in the following BN.
    h1 = jnp.dot(w1_ref[...], x_ref[...].T, preferred_element_type=jnp.float32)
    sum_ref[...] += jnp.sum(h1, axis=1, keepdims=True)                       # (16, 1)
    m2_ref[...] += jnp.dot(h1, h1.T, preferred_element_type=jnp.float32)     # (16, 16)


# ---------------------------------------------------------------------------
# Pass B: per batch tile, apply the (stats-folded) network:
#   a1 = W1f @ x^T + t1      (fc1 + BN1 folded)
#   a2 = W2f @ a1  + t2      (fc2 + BN2 folded; fc2 bias cancelled)
#   y  = W3  @ a2  + b3      (fc3)
# All activations are (features, TB) -> lane-dense; output store is unmasked.
# ---------------------------------------------------------------------------
def _fwd_kernel(x_ref, wpack_ref, t1_ref, t2_ref, b3_ref, o_ref):
    w1f = wpack_ref[:, 0:27]        # (16, 27)  BN1-scale-folded fc1 weight
    w2f = wpack_ref[:, 128:144]     # (16, 16)  BN2-scale-folded fc2 weight
    w3 = wpack_ref[0:8, 256:272]    # (8, 16)   fc3 weight

    a1 = jnp.dot(w1f, x_ref[...].T, preferred_element_type=jnp.float32) + t1_ref[...]
    a2 = jnp.dot(w2f, a1, preferred_element_type=jnp.float32) + t2_ref[...]
    y = jnp.dot(w3, a2, preferred_element_type=jnp.float32) + b3_ref[...]
    o_ref[...] = y.astype(o_ref.dtype)


def _fold_bn(stats_sum, stats_m2, params, batch_size):
    """Turn accumulated fc1 stats + raw params into folded weights/shifts.

    Tiny O(16^2) math, executed once per forward outside the kernels.
    """
    w1, w2, w3 = params["w1"], params["w2"], params["w3"]
    g1, be1 = params["g1"], params["be1"]
    g2, be2 = params["g2"], params["be2"]
    b3 = params["b3"]

    inv_b = 1.0 / float(batch_size)
    mu1 = stats_sum * inv_b                                   # (16, 1)
    cov1 = stats_m2 * inv_b - mu1 * mu1.T                     # (16, 16)  E[hh^T]-mu mu^T
    var1 = jnp.diagonal(cov1)[:, None]                        # (16, 1)   biased batch var
    s1 = g1 * jax.lax.rsqrt(var1 + EPS)                       # BN1 scale
    t1 = be1 - s1 * mu1                                       # BN1 shift

    # Layer-2 batch statistics follow analytically:
    #   a1 = s1*(h1-mu1)+be1  =>  mean(a1) = be1,  Cov(a1) = diag(s1) Cov1 diag(s1)
    #   h2 = W2 @ a1 (fc2 bias cancels in BN2)
    #   mean(h2) = W2 @ be1,  Var(h2) = diag(W2 diag(s1) Cov1 diag(s1) W2^T)
    mu2 = w2 @ be1                                            # (16, 1)
    c = w2 * s1.T                                             # (16, 16) = W2 @ diag(s1)
    var2 = jnp.sum((c @ cov1) * c, axis=1, keepdims=True)     # (16, 1)
    s2 = g2 * jax.lax.rsqrt(var2 + EPS)
    t2 = be2 - s2 * mu2

    w1f = s1 * w1                                             # fold BN1 scale into fc1
    w2f = s2 * w2                                             # fold BN2 scale into fc2

    # Pack the three weight matrices into one lane-aligned VMEM slab
    # (slices start at lane offsets 0 / 128 / 256 inside the kernel).
    wpack = jnp.zeros((16, 384), jnp.float32)
    wpack = wpack.at[:, 0:27].set(w1f)
    wpack = wpack.at[:, 128:144].set(w2f)
    wpack = wpack.at[0:8, 256:272].set(w3)
    return wpack, t1, t2, b3


def net_forward(x, params, *, block_b=1024):
    """x: (B, 27) float32.  Returns (B, 8) float32 (training-mode BN forward)."""
    B, F = x.shape
    assert F == 27, F

    # Batch tile: multiple of 128 lanes, clamped to the (128-rounded) batch.
    block = max(128, (min(block_b, _round_up(B, 128)) // 128) * 128)
    Bp = _round_up(B, block)
    xp = x if Bp == B else jnp.pad(x, ((0, Bp - B), (0, 0)))   # zero rows: stats-safe
    grid = (Bp // block,)

    x_spec = pl.BlockSpec((block, 27), lambda j: (j, 0))
    cparams_red = pltpu.CompilerParams(
        dimension_semantics=("arbitrary",),        # grid axis is a stats reduction
        vmem_limit_bytes=32 * 1024 * 1024)
    cparams_par = pltpu.CompilerParams(
        dimension_semantics=("parallel",),         # batch tiles independent (megacore OK)
        vmem_limit_bytes=32 * 1024 * 1024)

    # ---- Pass A: full-batch fc1 statistics ---------------------------------
    stats_sum, stats_m2 = pl.pallas_call(
        _stats_kernel,
        out_shape=(jax.ShapeDtypeStruct((16, 1), jnp.float32),
                   jax.ShapeDtypeStruct((16, 16), jnp.float32)),
        grid_spec=pltpu.PrefetchScalarGridSpec(
            num_scalar_prefetch=0,
            grid=grid,
            in_specs=[x_spec,
                      pl.BlockSpec((16, 27), lambda j: (0, 0))],
            out_specs=[pl.BlockSpec((16, 1), lambda j: (0, 0)),
                       pl.BlockSpec((16, 16), lambda j: (0, 0))]),
        compiler_params=cparams_red,
    )(xp, params["w1"])

    # ---- Fold stats into affine parameters (tiny, outside the kernels) -----
    wpack, t1, t2, b3 = _fold_bn(stats_sum, stats_m2, params, B)

    # ---- Pass B: apply the folded network, lane-dense (8, Bp) output -------
    out_t = pl.pallas_call(
        _fwd_kernel,
        out_shape=jax.ShapeDtypeStruct((8, Bp), jnp.float32),
        grid_spec=pltpu.PrefetchScalarGridSpec(
            num_scalar_prefetch=0,
            grid=grid,
            in_specs=[x_spec,
                      pl.BlockSpec((16, 384), lambda j: (0, 0)),
                      pl.BlockSpec((16, 1), lambda j: (0, 0)),
                      pl.BlockSpec((16, 1), lambda j: (0, 0)),
                      pl.BlockSpec((8, 1), lambda j: (0, 0))],
            out_specs=pl.BlockSpec((8, block), lambda j: (0, j))),
        compiler_params=cparams_par,
    )(xp, wpack, t1, t2, b3)

    return out_t[:, :B].T                                      # back to (B, 8)


# ---------------------------------------------------------------------------
# Parameter init (mirrors nn.Linear / nn.BatchNorm1d defaults) and a pure-JAX
# reference that uses the *full* module semantics (including the fc1/fc2
# biases and two-sweep batch variance) to validate the folded kernel math.
# ---------------------------------------------------------------------------
def init_params(key):
    def lin(k, fan_in, fan_out):
        kw, kb = jax.random.split(k)
        bound = 1.0 / math.sqrt(fan_in)
        w = jax.random.uniform(kw, (fan_out, fan_in), jnp.float32, -bound, bound)
        b = jax.random.uniform(kb, (fan_out, 1), jnp.float32, -bound, bound)
        return w, b

    k1, k2, k3 = jax.random.split(key, 3)
    w1, b1 = lin(k1, 27, 16)
    w2, b2 = lin(k2, 16, 16)
    w3, b3 = lin(k3, 16, 8)
    return {
        "w1": w1, "b1": b1,
        "g1": jnp.ones((16, 1), jnp.float32), "be1": jnp.zeros((16, 1), jnp.float32),
        "w2": w2, "b2": b2,
        "g2": jnp.ones((16, 1), jnp.float32), "be2": jnp.zeros((16, 1), jnp.float32),
        "w3": w3, "b3": b3,
    }


def _reference_forward(x, p):
    def bn(h, g, be):
        mu = jnp.mean(h, axis=0, keepdims=True)
        var = jnp.mean((h - mu) ** 2, axis=0, keepdims=True)   # biased, training mode
        return (h - mu) / jnp.sqrt(var + EPS) * g + be

    h = x @ p["w1"].T + p["b1"].T
    h = bn(h, p["g1"].T, p["be1"].T)
    h = h @ p["w2"].T + p["b2"].T
    h = bn(h, p["g2"].T, p["be2"].T)
    return h @ p["w3"].T + p["b3"].T


if __name__ == "__main__":
    key = jax.random.PRNGKey(0)
    kx, kp, kg1, kb1, kg2, kb2 = jax.random.split(key, 6)

    B = 300                       # not a tile multiple: exercises padding + 3-tile grid
    x = jax.random.normal(kx, (B, 27), jnp.float32)
    params = init_params(kp)
    # Perturb BN affine params away from (gamma=1, beta=0) so the test
    # exercises the general folding math (as after some training).
    params["g1"] = params["g1"] + 0.1 * jax.random.normal(kg1, (16, 1), jnp.float32)
    params["be1"] = 0.1 * jax.random.normal(kb1, (16, 1), jnp.float32)
    params["g2"] = params["g2"] + 0.1 * jax.random.normal(kg2, (16, 1), jnp.float32)
    params["be2"] = 0.1 * jax.random.normal(kb2, (16, 1), jnp.float32)

    fwd = jax.jit(lambda xx, pp: net_forward(xx, pp, block_b=128))
    out = jax.block_until_ready(fwd(x, params))

    ref = _reference_forward(x, params)
    assert out.shape == (B, 8), out.shape
    max_err = float(jnp.max(jnp.abs(out - ref)))
    assert jnp.allclose(out, ref, atol=5e-4, rtol=5e-4), max_err

    # TODO(synk): BatchNorm1d running_mean/running_var buffer updates (a
    # training-mode side effect, not part of the returned activation) are not
    # materialized; only the forward output is computed.
    print("KERNEL_OK")
</pallas_src>

<mosaic_0001>
module attributes {stable_mosaic.version = 11 : i64} {
  func.func @_stats_kernel(%arg0: i32, %arg1: memref<128x27xf32, #tpu.memory_space<vmem>>, %arg2: memref<16x27xf32, #tpu.memory_space<vmem>>, %arg3: memref<16x1xf32, #tpu.memory_space<vmem>>, %arg4: memref<16x16xf32, #tpu.memory_space<vmem>>) attributes {dimension_semantics = [#tpu.dimension_semantics<arbitrary>], iteration_bounds = array<i64: 3>, scalar_prefetch = 0 : i64, scratch_operands = 0 : i64, tpu.core_type = #tpu.core_type<tc>, window_params = [{transform_indices = @transform_0, window_bounds = array<i64: 128, 27>}, {pipeline_mode = #tpu.pipeline_mode<synchronous>, transform_indices = @transform_1, window_bounds = array<i64: 16, 27>}, {pipeline_mode = #tpu.pipeline_mode<synchronous>, transform_indices = @transform_2, window_bounds = array<i64: 16, 1>}, {pipeline_mode = #tpu.pipeline_mode<synchronous>, transform_indices = @transform_3, window_bounds = array<i64: 16, 16>}]} {
    %c0_i32 = arith.constant 0 : i32
    %0 = arith.cmpi eq, %arg0, %c0_i32 : i32
    %1 = arith.extui %0 : i1 to i32
    %c0_i32_0 = arith.constant 0 : i32
    %2 = arith.cmpi ne, %1, %c0_i32_0 : i32
    scf.if %2 {
      %cst_14 = arith.constant 0.000000e+00 : f32
      %17 = vector.broadcast %cst_14 : f32 to vector<16x1xf32>
      %c0_15 = arith.constant 0 : index
      %c0_16 = arith.constant 0 : index
      %18 = vector.load %arg3[%c0_15, %c0_16] : memref<16x1xf32, #tpu.memory_space<vmem>>, vector<16x1xf32>
      tpu.vector_store %arg3[%c0_15, %c0_16], %17 {strides = array<i32>} : memref<16x1xf32, #tpu.memory_space<vmem>>, vector<16x1xf32>,
      %cst_17 = arith.constant 0.000000e+00 : f32
      %19 = vector.broadcast %cst_17 : f32 to vector<16x16xf32>
      %c0_18 = arith.constant 0 : index
      %c0_19 = arith.constant 0 : index
      %20 = vector.load %arg4[%c0_18, %c0_19] : memref<16x16xf32, #tpu.memory_space<vmem>>, vector<16x16xf32>
      tpu.vector_store %arg4[%c0_18, %c0_19], %19 {strides = array<i32>} : memref<16x16xf32, #tpu.memory_space<vmem>>, vector<16x16xf32>,
    } else {
    }
    %c0 = arith.constant 0 : index
    %c0_1 = arith.constant 0 : index
    %3 = vector.load %arg2[%c0, %c0_1] : memref<16x27xf32, #tpu.memory_space<vmem>>, vector<16x27xf32>
    %c0_2 = arith.constant 0 : index
    %c0_3 = arith.constant 0 : index
    %4 = vector.load %arg1[%c0_2, %c0_3] : memref<128x27xf32, #tpu.memory_space<vmem>>, vector<128x27xf32>
    %5 = tpu.transpose %4, [1, 0] : vector<128x27xf32> -> vector<27x128xf32>
    %cst = arith.constant dense<0.000000e+00> : vector<16x128xf32>
    %6 = tpu.matmul %3, %5, %cst {dimension_numbers = #tpu.dot_dimension_numbers<[1], [0], [0], [1], [0, 0, 1, 1], [], []>} : vector<16x27xf32>, vector<27x128xf32>, vector<16x128xf32> -> vector<16x128xf32>
    %c0_4 = arith.constant 0 : index
    %c0_5 = arith.constant 0 : index
    %7 = vector.load %arg3[%c0_4, %c0_5] : memref<16x1xf32, #tpu.memory_space<vmem>>, vector<16x1xf32>
    %cst_6 = arith.constant dense<0.000000e+00> : vector<16xf32>
    %8 = vector.multi_reduction <add>, %6, %cst_6 [1] : vector<16x128xf32> to vector<16xf32>
    %9 = vector.shape_cast %8 : vector<16xf32> to vector<16x1xf32>
    %10 = arith.addf %7, %9 : vector<16x1xf32>
    %c0_7 = arith.constant 0 : index
    %c0_8 = arith.constant 0 : index
    %11 = vector.load %arg3[%c0_7, %c0_8] : memref<16x1xf32, #tpu.memory_space<vmem>>, vector<16x1xf32>
    tpu.vector_store %arg3[%c0_7, %c0_8], %10 {strides = array<i32>} : memref<16x1xf32, #tpu.memory_space<vmem>>, vector<16x1xf32>,
    %c0_9 = arith.constant 0 : index
    %c0_10 = arith.constant 0 : index
    %12 = vector.load %arg4[%c0_9, %c0_10] : memref<16x16xf32, #tpu.memory_space<vmem>>, vector<16x16xf32>
    %13 = tpu.transpose %6, [1, 0] : vector<16x128xf32> -> vector<128x16xf32>
    %cst_11 = arith.constant dense<0.000000e+00> : vector<16x16xf32>
    %14 = tpu.matmul %6, %13, %cst_11 {dimension_numbers = #tpu.dot_dimension_numbers<[1], [0], [0], [1], [0, 0, 1, 1], [], []>} : vector<16x128xf32>, vector<128x16xf32>, vector<16x16xf32> -> vector<16x16xf32>
    %15 = arith.addf %12, %14 : vector<16x16xf32>
    %c0_12 = arith.constant 0 : index
    %c0_13 = arith.constant 0 : index
    %16 = vector.load %arg4[%c0_12, %c0_13] : memref<16x16xf32, #tpu.memory_space<vmem>>, vector<16x16xf32>
    tpu.vector_store %arg4[%c0_12, %c0_13], %15 {strides = array<i32>} : memref<16x16xf32, #tpu.memory_space<vmem>>, vector<16x16xf32>,
    return
  }
  func.func @transform_0(%arg0: i32) -> (i32, i32) {
    %c0_i32 = arith.constant 0 : i32
    %c0_i32_0 = arith.constant 0 : i32
    return %arg0, %c0_i32 : i32, i32
  }
  func.func @transform_1(%arg0: i32) -> (i32, i32) {
    %c0_i32 = arith.constant 0 : i32
    %c0_i32_0 = arith.constant 0 : i32
    %c0_i32_1 = arith.constant 0 : i32
    return %c0_i32, %c0_i32_0 : i32, i32
  }
  func.func @transform_2(%arg0: i32) -> (i32, i32) {
    %c0_i32 = arith.constant 0 : i32
    %c0_i32_0 = arith.constant 0 : i32
    %c0_i32_1 = arith.constant 0 : i32
    return %c0_i32, %c0_i32_0 : i32, i32
  }
  func.func @transform_3(%arg0: i32) -> (i32, i32) {
    %c0_i32 = arith.constant 0 : i32
    %c0_i32_0 = arith.constant 0 : i32
    %c0_i32_1 = arith.constant 0 : i32
    return %c0_i32, %c0_i32_0 : i32, i32
  }
}

module attributes {stable_mosaic.version = 11 : i64} {
  func.func @_fwd_kernel(%arg0: i32, %arg1: memref<128x27xf32, #tpu.memory_space<vmem>>, %arg2: memref<16x384xf32, #tpu.memory_space<vmem>>, %arg3: memref<16x1xf32, #tpu.memory_space<vmem>>, %arg4: memref<16x1xf32, #tpu.memory_space<vmem>>, %arg5: memref<8x1xf32, #tpu.memory_space<vmem>>, %arg6: memref<8x128xf32, #tpu.memory_space<vmem>>) attributes {dimension_semantics = [#tpu.dimension_semantics<parallel>], iteration_bounds = array<i64: 3>, scalar_prefetch = 0 : i64, scratch_operands = 0 : i64, tpu.core_type = #tpu.core_type<tc>, window_params = [{transform_indices = @transform_0, window_bounds = array<i64: 128, 27>}, {pipeline_mode = #tpu.pipeline_mode<synchronous>, transform_indices = @transform_1, window_bounds = array<i64: 16, 384>}, {pipeline_mode = #tpu.pipeline_mode<synchronous>, transform_indices = @transform_2, window_bounds = array<i64: 16, 1>}, {pipeline_mode = #tpu.pipeline_mode<synchronous>, transform_indices = @transform_3, window_bounds = array<i64: 16, 1>}, {pipeline_mode = #tpu.pipeline_mode<synchronous>, transform_indices = @transform_4, window_bounds = array<i64: 8, 1>}, {transform_indices = @transform_5, window_bounds = array<i64: 8, 128>}]} {
    %c0 = arith.constant 0 : index
    %c0_0 = arith.constant 0 : index
    %0 = vector.load %arg2[%c0, %c0_0] : memref<16x384xf32, #tpu.memory_space<vmem>>, vector<16x27xf32>
    %c0_1 = arith.constant 0 : index
    %c128 = arith.constant 128 : index
    %1 = vector.load %arg2[%c0_1, %c128] : memref<16x384xf32, #tpu.memory_space<vmem>>, vector<16x16xf32>
    %c0_2 = arith.constant 0 : index
    %c256 = arith.constant 256 : index
    %2 = vector.load %arg2[%c0_2, %c256] : memref<16x384xf32, #tpu.memory_space<vmem>>, vector<8x16xf32>
    %c0_3 = arith.constant 0 : index
    %c0_4 = arith.constant 0 : index
    %3 = vector.load %arg1[%c0_3, %c0_4] : memref<128x27xf32, #tpu.memory_space<vmem>>, vector<128x27xf32>
    %4 = tpu.transpose %3, [1, 0] : vector<128x27xf32> -> vector<27x128xf32>
    %cst = arith.constant dense<0.000000e+00> : vector<16x128xf32>
    %5 = tpu.matmul %0, %4, %cst {dimension_numbers = #tpu.dot_dimension_numbers<[1], [0], [0], [1], [0, 0, 1, 1], [], []>} : vector<16x27xf32>, vector<27x128xf32>, vector<16x128xf32> -> vector<16x128xf32>
    %c0_5 = arith.constant 0 : index
    %c0_6 = arith.constant 0 : index
    %6 = vector.load %arg3[%c0_5, %c0_6] : memref<16x1xf32, #tpu.memory_space<vmem>>, vector<16x1xf32>
    %7 = vector.broadcast %6 : vector<16x1xf32> to vector<16x128xf32>
    %8 = arith.addf %5, %7 : vector<16x128xf32>
    %cst_7 = arith.constant dense<0.000000e+00> : vector<16x128xf32>
    %9 = tpu.matmul %1, %8, %cst_7 {dimension_numbers = #tpu.dot_dimension_numbers<[1], [0], [0], [1], [0, 0, 1, 1], [], []>} : vector<16x16xf32>, vector<16x128xf32>, vector<16x128xf32> -> vector<16x128xf32>
    %c0_8 = arith.constant 0 : index
    %c0_9 = arith.constant 0 : index
    %10 = vector.load %arg4[%c0_8, %c0_9] : memref<16x1xf32, #tpu.memory_space<vmem>>, vector<16x1xf32>
    %11 = vector.broadcast %10 : vector<16x1xf32> to vector<16x128xf32>
    %12 = arith.addf %9, %11 : vector<16x128xf32>
    %cst_10 = arith.constant dense<0.000000e+00> : vector<8x128xf32>
    %13 = tpu.matmul %2, %12, %cst_10 {dimension_numbers = #tpu.dot_dimension_numbers<[1], [0], [0], [1], [0, 0, 1, 1], [], []>} : vector<8x16xf32>, vector<16x128xf32>, vector<8x128xf32> -> vector<8x128xf32>
    %c0_11 = arith.constant 0 : index
    %c0_12 = arith.constant 0 : index
    %14 = vector.load %arg5[%c0_11, %c0_12] : memref<8x1xf32, #tpu.memory_space<vmem>>, vector<8x1xf32>
    %15 = vector.broadcast %14 : vector<8x1xf32> to vector<8x128xf32>
    %16 = arith.addf %13, %15 : vector<8x128xf32>
    %c0_13 = arith.constant 0 : index
    %c0_14 = arith.constant 0 : index
    %17 = vector.load %arg6[%c0_13, %c0_14] : memref<8x128xf32, #tpu.memory_space<vmem>>, vector<8x128xf32>
    tpu.vector_store %arg6[%c0_13, %c0_14], %16 {strides = array<i32>} : memref<8x128xf32, #tpu.memory_space<vmem>>, vector<8x128xf32>,
    return
  }
  func.func @transform_0(%arg0: i32) -> (i32, i32) {
    %c0_i32 = arith.constant 0 : i32
    %c0_i32_0 = arith.constant 0 : i32
    return %arg0, %c0_i32 : i32, i32
  }
  func.func @transform_1(%arg0: i32) -> (i32, i32) {
    %c0_i32 = arith.constant 0 : i32
    %c0_i32_0 = arith.constant 0 : i32
    %c0_i32_1 = arith.constant 0 : i32
    return %c0_i32, %c0_i32_0 : i32, i32
  }
  func.func @transform_2(%arg0: i32) -> (i32, i32) {
    %c0_i32 = arith.constant 0 : i32
    %c0_i32_0 = arith.constant 0 : i32
    %c0_i32_1 = arith.constant 0 : i32
    return %c0_i32, %c0_i32_0 : i32, i32
  }
  func.func @transform_3(%arg0: i32) -> (i32, i32) {
    %c0_i32 = arith.constant 0 : i32
    %c0_i32_0 = arith.constant 0 : i32
    %c0_i32_1 = arith.constant 0 : i32
    return %c0_i32, %c0_i32_0 : i32, i32
  }
  func.func @transform_4(%arg0: i32) -> (i32, i32) {
    %c0_i32 = arith.constant 0 : i32
    %c0_i32_0 = arith.constant 0 : i32
    %c0_i32_1 = arith.constant 0 : i32
    return %c0_i32, %c0_i32_0 : i32, i32
  }
  func.func @transform_5(%arg0: i32) -> (i32, i32) {
    %c0_i32 = arith.constant 0 : i32
    %c0_i32_0 = arith.constant 0 : i32
    return %c0_i32, %arg0 : i32, i32
  }
}

</mosaic_0001>

<bundles_post_ra>
// kernel: _lambda_.2
= control target key start
LH: loop header
LB: loop body
LE: loop exit
PB: predicated region body
PF: predicated region fallthrough
CT: control target
= control target key end

     0   :  { %s418_s12 = smov 0   ;;  %s526_s0 = inlined_call_operand.vmem [shape: f32[384,27], index: 0, kind: input, shape index: {}]   ;;  %s527_s1 = inlined_call_operand.vmem [shape: f32[16,27], index: 1, kind: input, shape index: {}]   ;;  %s528_s2 = inlined_call_operand.vmem [shape: f32[16,1], index: 2, kind: output, shape index: {0}]   ;;  %s529_s3 = inlined_call_operand.vmem [shape: f32[16,16], index: 3, kind: output, shape index: {1}]  }
   0x1 LB: > { %s337_s13 = sadd.s32 4294967295, %s395_s12   ;;  %p340_p0 = scmp.ge.s32.totalorder %s395_s12, 1  ;;  %s395_s12 = sphi %s418_s12, %s14_s12  }
   0x2   : > { %p131_p1 = scmp.lt.s32.totalorder %s395_s12, 4 }
   0x4   : > { %p132_p2 = pnand %p340_p0, %p131_p1 }
   0x5   : > { %s341_s14 = sshll.u32 (!%p132_p2), %s337_s13, 4  ;;  %p343_p4 = scmp.ne.s32.totalorder (!%p132_p2), %s337_s13, 0 }
   0x6   : > { %135 = sbr.rel (%p132_p2) target bundleno = 361 (0x169), region = 28  ;;  %p151_p3 = scmp.lt.s32.totalorder (!%p132_p2), %s341_s14, 47 }
   0xb   : > { %s531_s14 = smov (!%p151_p3, %s341_s14), 47  ;;  %159 = sbr.rel (%p343_p4) target bundleno = 21 (0x15), region = 32 }
   0xc   : > { %s342_s15 = sshll.u32 %s531_s14, 3 }
   0xd   : > { %s429_s18 = scalar_lea.vmem %s526_s0, %s342_s15 }
  0x10   : > { %vm160_vm0 = vcmask 7168   ;;  %vm163_vm1 = vcmask 130048   ;;  %v397_v0 = vmov 0.0  }
  0x11   : > { %161 = vst.msk [vmem:[%s528_s2] sm:$0xff] %vm160_vm0, %v397_v0 }
  0x12   : > { %162 = vst.msk [vmem:[%s528_s2 + $0x8] sm:$0xff] %vm160_vm0, %v397_v0 }
  0x13   : > { %164 = vst.msk [vmem:[%s529_s3] sm:$0xff] %vm163_vm1, %v397_v0 }
  0x14   : > { %165 = vst.msk [vmem:[%s529_s3 + $0x8] sm:$0xff] %vm163_vm1, %v397_v0 }
  0x15 PF: > { %v183_v1 = vld [vmem:[%s429_s18 + $0x78] sm:$0xff]  ;;  %vm184_vm2 = vcmask 220160   ;;  %v182_v2 = vld [vmem:[%s429_s18 + $0x70] sm:$0xff]  ;;  %v181_v3 = vld [vmem:[%s429_s18 + $0x68] sm:$0xff]  ;;  %vm270_vm3 = vcmask 7168   ;;  %vm300_vm4 = vcmask 130048  }
  0x16   : > { %344 = vmatpush.xpose.msk.msra.mxu0 %vm184_vm2, %v183_v1  ;;  %364 = vmatpush.xpose.msk.msra.mxu2 %vm184_vm2, %v183_v1  ;;  %v180_v4 = vld [vmem:[%s429_s18 + $0x60] sm:$0xff]  ;;  %v179_v5 = vld [vmem:[%s429_s18 + $0x58] sm:$0xff]  ;;  %v178_v6 = vld [vmem:[%s429_s18 + $0x50] sm:$0xff] }
  0x17   : > { %v177_v7 = vld [vmem:[%s429_s18 + $0x48] sm:$0xff]  ;;  %v176_v8 = vld [vmem:[%s429_s18 + $0x40] sm:$0xff]  ;;  %v175_v9 = vld [vmem:[%s429_s18 + $0x38] sm:$0xff] }
  0x18   : > { %v174_v10 = vld [vmem:[%s429_s18 + $0x30] sm:$0xff]  ;;  %v173_v11 = vld [vmem:[%s429_s18 + $0x28] sm:$0xff]  ;;  %v172_v12 = vld [vmem:[%s429_s18 + $0x20] sm:$0xff] }
  0x19   : > { %v171_v13 = vld [vmem:[%s429_s18 + $0x18] sm:$0xff]  ;;  %v170_v14 = vld [vmem:[%s429_s18 + $0x10] sm:$0xff]  ;;  %v169_v15 = vld [vmem:[%s429_s18 + $0x8] sm:$0xff] }
  0x1a   : > { %345 = vmatpush.xpose.msk.msra.mxu0 %vm184_vm2, %v182_v2  ;;  %365 = vmatpush.xpose.msk.msra.mxu2 %vm184_vm2, %v182_v2  ;;  %v168_v16 = vld [vmem:[%s429_s18] sm:$0xff]  ;;  %v167_v18 = vld [vmem:[%s527_s1 + $0x8] sm:$0xff] }
  0x1b   : > { %v166_v17 = vld [vmem:[%s527_s1] sm:$0xff]  ;;  %v263_v24 = vld [vmem:[%s528_s2 + $0x8] sm:$0xff] }
  0x1c   : > { %v262_v21 = vld [vmem:[%s528_s2] sm:$0xff]  ;;  %v274_v30 = vld [vmem:[%s529_s3 + $0x8] sm:$0xff] }
  0x1d   : > { %v273_v27 = vld [vmem:[%s529_s3] sm:$0xff] }
  0x1e   : > { %346 = vmatpush.xpose.msk.msra.mxu0 %vm184_vm2, %v181_v3  ;;  %366 = vmatpush.xpose.msk.msra.mxu2 %vm184_vm2, %v181_v3 }
  0x22   : > { %347 = vmatpush.xpose.msk.msra.mxu0 %vm184_vm2, %v180_v4  ;;  %367 = vmatpush.xpose.msk.msra.mxu2 %vm184_vm2, %v180_v4 }
  0x26   : > { %348 = vmatpush.xpose.msk.msra.mxu0 %vm184_vm2, %v179_v5  ;;  %368 = vmatpush.xpose.msk.msra.mxu2 %vm184_vm2, %v179_v5 }
  0x2a   : > { %349 = vmatpush.xpose.msk.msra.mxu0 %vm184_vm2, %v178_v6  ;;  %369 = vmatpush.xpose.msk.msra.mxu2 %vm184_vm2, %v178_v6 }
  0x2e   : > { %350 = vmatpush.xpose.msk.msra.mxu0 %vm184_vm2, %v177_v7  ;;  %370 = vmatpush.xpose.msk.msra.mxu2 %vm184_vm2, %v177_v7 }
  0x32   : > { %351 = vmatpush.xpose.msk.msra.mxu0 %vm184_vm2, %v176_v8  ;;  %371 = vmatpush.xpose.msk.msra.mxu2 %vm184_vm2, %v176_v8 }
  0x36   : > { %352 = vmatpush.xpose.msk.msra.mxu0 %vm184_vm2, %v175_v9  ;;  %372 = vmatpush.xpose.msk.msra.mxu2 %vm184_vm2, %v175_v9 }
  0x3a   : > { %353 = vmatpush.xpose.msk.msra.mxu0 %vm184_vm2, %v174_v10  ;;  %373 = vmatpush.xpose.msk.msra.mxu2 %vm184_vm2, %v174_v10 }
  0x3e   : > { %354 = vmatpush.xpose.msk.msra.mxu0 %vm184_vm2, %v173_v11  ;;  %374 = vmatpush.xpose.msk.msra.mxu2 %vm184_vm2, %v173_v11 }
  0x42   : > { %355 = vmatpush.xpose.msk.msra.mxu0 %vm184_vm2, %v172_v12  ;;  %375 = vmatpush.xpose.msk.msra.mxu2 %vm184_vm2, %v172_v12 }
  0x46   : > { %356 = vmatpush.xpose.msk.msra.mxu0 %vm184_vm2, %v171_v13  ;;  %376 = vmatpush.xpose.msk.msra.mxu2 %vm184_vm2, %v171_v13 }
  0x4a   : > { %357 = vmatpush.xpose.msk.msra.mxu0 %vm184_vm2, %v170_v14  ;;  %377 = vmatpush.xpose.msk.msra.mxu2 %vm184_vm2, %v170_v14 }
  0x4e   : > { %358 = vmatpush.xpose.msk.msra.mxu0 %vm184_vm2, %v169_v15  ;;  %378 = vmatpush.xpose.msk.msra.mxu2 %vm184_vm2, %v169_v15 }
  0x52   : > { %359 = vmatpush.xpose.msk.msra.mxu0 %vm184_vm2, %v168_v16  ;;  %379 = vmatpush.xpose.msk.msra.mxu2 %vm184_vm2, %v168_v16 }
  0x55   : > { %360 = vmatmul.msk.f32.vlgmr.msra.gmra.mxu0 %vm184_vm2, %v166_v17  ;;  %361 = vmatmul.msk.f32.vlgmr.msra.gmra.mxu2 %vm184_vm2, %v167_v18 }
  0xd2   : > { %v256_v19 = vpop.f32.mrf.mxu0 }
  0xd3   : > { %264 = vadd.xlane.f32.xlu0 %v256_v19 }
  0xd8   : > { %v259_v20 = vpop.f32.mrf.mxu2 }
  0xd9   : > { %289 = vmatpush.xpose.msra.mxu1 %v259_v20 }
  0xdb   : > { %266 = vadd.xlane.f32.xlu0 %v259_v20 }
  0xdd   : > { %290 = vmatpush.xpose.msra.mxu1 %v256_v19 }
  0xe0   : > { %291 = vmatmul.f32.vlgmr.msra.gmra.mxu1 %v256_v19 }
  0xe8   : > { %294 = vmatmul.f32.gmra.mxu1 %v259_v20 }
 0x146   : > { %v265_v22 = vpop.xlane.xlu0 %264 }
 0x147   : > { %v268_v23 = vadd.f32 %v265_v22, %v262_v21 }
 0x149   : > { %271 = vst.msk [vmem:[%s528_s2] sm:$0xff] %vm270_vm3, %v268_v23 }
 0x14e   : > { %v267_v25 = vpop.xlane.xlu0 %266 }
 0x14f   : > { %v269_v26 = vadd.f32 %v267_v25, %v263_v24 }
 0x151   : > { %272 = vst.msk [vmem:[%s528_s2 + $0x8] sm:$0xff] %vm270_vm3, %v269_v26 }
 0x15d   : > { %v292_v28 = vpop.f32.mrf.mxu1 }
 0x15e   : > { %v298_v29 = vadd.f32 %v292_v28, %v273_v27 }
 0x160   : > { %301 = vst.msk [vmem:[%s529_s3] sm:$0xff] %vm300_vm4, %v298_v29 }
 0x165   : > { %v295_v31 = vpop.f32.mrf.mxu1 }
 0x166   : > { %v299_v32 = vadd.f32 %v295_v31, %v274_v30 }
 0x168   : > { %302 = vst.msk [vmem:[%s529_s3 + $0x8] sm:$0xff] %vm300_vm4, %v299_v32 }
 0x169 PF: > { %s14_s12 = sadd.s32 1, %s395_s12  }
 0x16a   : > { %p11_p5 = scmp.ge.s32.totalorder %s14_s12, 5  }
 0x16c   :  { %13 = sbr.rel (!%p11_p5) target bundleno = 1 (0x1), region = 66 }

// kernel: _lambda_.3
= control target key start
LH: loop header
LB: loop body
LE: loop exit
PB: predicated region body
PF: predicated region fallthrough
CT: control target
= control target key end

     0   :  { %s559_s18 = smov 0   ;;  %s666_s0 = inlined_call_operand.vmem [shape: f32[384,27], index: 0, kind: input, shape index: {}]   ;;  %s667_s1 = inlined_call_operand.vmem [shape: f32[16,384], index: 1, kind: input, shape index: {}]   ;;  %s668_s2 = inlined_call_operand.vmem [shape: f32[16,1], index: 2, kind: input, shape index: {}]   ;;  %s669_s3 = inlined_call_operand.vmem [shape: f32[16,1], index: 3, kind: input, shape index: {}]   ;;  %s670_s4 = inlined_call_operand.vmem [shape: f32[8,1], index: 4, kind: input, shape index: {}]   ;;  %s671_s5 = inlined_call_operand.vmem [shape: f32[8,384], index: 5, kind: output, shape index: {}]  }
   0x1 LB: > { %s565_s19 = sadd.s32 4294967295, %s526_s18   ;;  %p465_p0 = scmp.ge.s32.totalorder %s526_s18, 1  ;;  %s526_s18 = sphi %s559_s18, %s15_s18  }
   0x2   : > { %p188_p1 = scmp.lt.s32.totalorder %s526_s18, 4 }
   0x4   : > { %p189_p2 = pnand %p465_p0, %p188_p1 }
   0x5   : > { %s466_s20 = sshll.u32 (!%p189_p2), %s565_s19, 4  ;;  %p221_p4 = scmp.lt.s32.totalorder (!%p189_p2), %s565_s19, 2 }
   0x6   : > { %192 = sbr.rel (%p189_p2) target bundleno = 489 (0x1e9), region = 40  ;;  %p216_p3 = scmp.lt.s32.totalorder (!%p189_p2), %s466_s20, 47 }
   0xb   : > { %s673_s20 = smov (!%p216_p3, %s466_s20), 47  ;;  %vm258_vm0 = vcmask 220160   ;;  %v247_v9 = vld [vmem:[%s668_s2 + $0x8] sm:$0xff]  ;;  %v528_v11 = vmov 0   ;;  %v246_v13 = vld [vmem:[%s668_s2] sm:$0xff]  ;;  %v226_v20 = vld [vmem:[%s667_s1 + $0x18] sm:$0xff] }
   0xc   : > { %s467_s21 = sshll.u32 %s673_s20, 3  ;;  %517 = vset.pattern.permute.xlu0 %v528_v11  ;;  %518 = vset.pattern.permute.xlu1 %v528_v11  ;;  %v225_v19 = vld [vmem:[%s667_s1] sm:$0xff]  ;;  %v337_v21 = vld [vmem:[%s669_s3 + $0x8] sm:$0xff]  ;;  %vm348_vm1 = vcmask 130048   ;;  %v229_v38 = vld [vmem:[%s667_s1 + $0x10] sm:$0xff]  ;;  %s675_s19 = smov (!%p221_p4, %s565_s19), 2 }
   0xd   : > { %s573_s24 = scalar_lea.vmem %s666_s0, %s467_s21  ;;  %255 = vperm.xlu0 %517, %v247_v9   ;;  %519 = vset.pattern.permute.xlu2 %v528_v11  ;;  %v336_v22 = vld [vmem:[%s669_s3] sm:$0xff]  ;;  %v227_v29 = vld [vmem:[%s667_s1 + $0x8] sm:$0xff]  ;;  %s468_s22 = sshll.u32 %s675_s19, 3 }
   0xe   : > { %v245_v0 = vld [vmem:[%s573_s24 + $0x78] sm:$0xff]  ;;  %v244_v1 = vld [vmem:[%s573_s24 + $0x70] sm:$0xff]  ;;  %v243_v2 = vld [vmem:[%s573_s24 + $0x68] sm:$0xff]  ;;  %345 = vperm.xlu1 %518, %v337_v21   ;;  %s224_s25 = scalar_lea.vmem %s671_s5, %s468_s22 }
   0xf   : > { %469 = vmatpush.xpose.msk.msra.mxu0 %vm258_vm0, %v245_v0  ;;  %492 = vmatpush.xpose.msk.msra.mxu3 %vm258_vm0, %v245_v0  ;;  %v242_v3 = vld [vmem:[%s573_s24 + $0x60] sm:$0xff]  ;;  %v241_v4 = vld [vmem:[%s573_s24 + $0x58] sm:$0xff]  ;;  %v240_v5 = vld [vmem:[%s573_s24 + $0x50] sm:$0xff] }
  0x10   : > { %v239_v6 = vld [vmem:[%s573_s24 + $0x48] sm:$0xff]  ;;  %v238_v7 = vld [vmem:[%s573_s24 + $0x40] sm:$0xff]  ;;  %v237_v8 = vld [vmem:[%s573_s24 + $0x38] sm:$0xff] }
  0x11   : > { %v236_v10 = vld [vmem:[%s573_s24 + $0x30] sm:$0xff]  ;;  %v235_v12 = vld [vmem:[%s573_s24 + $0x28] sm:$0xff]  ;;  %v234_v14 = vld [vmem:[%s573_s24 + $0x20] sm:$0xff] }
  0x12   : > { %v233_v15 = vld [vmem:[%s573_s24 + $0x18] sm:$0xff]  ;;  %v232_v16 = vld [vmem:[%s573_s24 + $0x10] sm:$0xff]  ;;  %v231_v17 = vld [vmem:[%s573_s24 + $0x8] sm:$0xff] }
  0x13   : > { %470 = vmatpush.xpose.msk.msra.mxu0 %vm258_vm0, %v244_v1  ;;  %493 = vmatpush.xpose.msk.msra.mxu3 %vm258_vm0, %v244_v1  ;;  %v230_v18 = vld [vmem:[%s573_s24] sm:$0xff] }
  0x14   : > { %v228_v30 = vld [vmem:[%s667_s1 + $0x20] sm:$0xff] }
  0x15   : > { %250 = vperm.xlu0 %517, %v246_v13   ;;  %v378_v31 = vld [vmem:[%s670_s4] sm:$0xff] }
  0x16   : > { %340 = vperm.xlu1 %518, %v336_v22   ;;  %381 = vperm.xlu2 %519, %v378_v31  }
  0x17   : > { %471 = vmatpush.xpose.msk.msra.mxu0 %vm258_vm0, %v243_v2  ;;  %494 = vmatpush.xpose.msk.msra.mxu3 %vm258_vm0, %v243_v2 }
  0x1b   : > { %472 = vmatpush.xpose.msk.msra.mxu0 %vm258_vm0, %v242_v3  ;;  %495 = vmatpush.xpose.msk.msra.mxu3 %vm258_vm0, %v242_v3 }
  0x1f   : > { %473 = vmatpush.xpose.msk.msra.mxu0 %vm258_vm0, %v241_v4  ;;  %496 = vmatpush.xpose.msk.msra.mxu3 %vm258_vm0, %v241_v4 }
  0x23   : > { %474 = vmatpush.xpose.msk.msra.mxu0 %vm258_vm0, %v240_v5  ;;  %497 = vmatpush.xpose.msk.msra.mxu3 %vm258_vm0, %v240_v5 }
  0x27   : > { %475 = vmatpush.xpose.msk.msra.mxu0 %vm258_vm0, %v239_v6  ;;  %498 = vmatpush.xpose.msk.msra.mxu3 %vm258_vm0, %v239_v6 }
  0x2b   : > { %476 = vmatpush.xpose.msk.msra.mxu0 %vm258_vm0, %v238_v7  ;;  %499 = vmatpush.xpose.msk.msra.mxu3 %vm258_vm0, %v238_v7 }
  0x2f   : > { %477 = vmatpush.xpose.msk.msra.mxu0 %vm258_vm0, %v237_v8  ;;  %500 = vmatpush.xpose.msk.msra.mxu3 %vm258_vm0, %v237_v8 }
  0x33   : > { %478 = vmatpush.xpose.msk.msra.mxu0 %vm258_vm0, %v236_v10  ;;  %501 = vmatpush.xpose.msk.msra.mxu3 %vm258_vm0, %v236_v10 }
  0x37   : > { %479 = vmatpush.xpose.msk.msra.mxu0 %vm258_vm0, %v235_v12  ;;  %502 = vmatpush.xpose.msk.msra.mxu3 %vm258_vm0, %v235_v12 }
  0x3b   : > { %480 = vmatpush.xpose.msk.msra.mxu0 %vm258_vm0, %v234_v14  ;;  %503 = vmatpush.xpose.msk.msra.mxu3 %vm258_vm0, %v234_v14 }
  0x3f   : > { %481 = vmatpush.xpose.msk.msra.mxu0 %vm258_vm0, %v233_v15  ;;  %504 = vmatpush.xpose.msk.msra.mxu3 %vm258_vm0, %v233_v15 }
  0x43   : > { %482 = vmatpush.xpose.msk.msra.mxu0 %vm258_vm0, %v232_v16  ;;  %505 = vmatpush.xpose.msk.msra.mxu3 %vm258_vm0, %v232_v16 }
  0x47   : > { %483 = vmatpush.xpose.msk.msra.mxu0 %vm258_vm0, %v231_v17  ;;  %506 = vmatpush.xpose.msk.msra.mxu3 %vm258_vm0, %v231_v17 }
  0x4b   : > { %484 = vmatpush.xpose.msk.msra.mxu0 %vm258_vm0, %v230_v18  ;;  %507 = vmatpush.xpose.msk.msra.mxu3 %vm258_vm0, %v230_v18 }
  0x4e   : > { %485 = vmatmul.msk.f32.vlgmr.msra.gmra.mxu0 %vm258_vm0, %v225_v19  ;;  %486 = vmatmul.msk.f32.vlgmr.msra.gmra.mxu3 %vm258_vm0, %v226_v20 }
  0x70   : > { %v382_v39 = vpop.permute.xlu2 %381 }
  0x7f   : > { %v256_v23 = vpop.permute.xlu0 %255 }
  0x80   : > { %v346_v32 = vpop.permute.xlu1 %345 }
  0x87   : > { %v251_v24 = vpop.permute.xlu0 %250 }
  0x88   : > { %v341_v34 = vpop.permute.xlu1 %340 }
  0xcb   : > { %v330_v25 = vpop.f32.mrf.mxu0 }
  0xcc   : > { %v331_v28 = vadd.f32 %v330_v25, %v251_v24 }
  0xd1   : > { %v333_v26 = vpop.f32.mrf.mxu3 }
  0xd2   : > { %v334_v27 = vadd.f32 %v333_v26, %v256_v23 }
  0xd4   : > { %369 = vmatpush.msra.mxu1 %v334_v27 }
  0xd6   : > { %370 = vmatpush.msra.mxu1 %v331_v28 }
  0xd7   : > { %487 = vmatmul.msk.f32.vlgmr.msra.gmra.mxu1 %vm348_vm1, %v227_v29 }
  0xdf   : > { %488 = vmatmul.msk.f32.gmra.mxu1 %vm348_vm1, %v228_v30 }
 0x154   : > { %v372_v33 = vpop.f32.mrf.mxu1 }
 0x155   : > { %v373_v37 = vadd.f32 %v372_v33, %v341_v34 }
 0x15c   : > { %v375_v35 = vpop.f32.mrf.mxu1 }
 0x15d   : > { %v376_v36 = vadd.f32 %v375_v35, %v346_v32 }
 0x15f   : > { %401 = vmatpush.msra.mxu2 %v376_v36 }
 0x161   : > { %402 = vmatpush.msra.mxu2 %v373_v37 }
 0x162   : > { %489 = vmatmul.msk.f32.vlgmr.msra.gmra.mxu2 %vm348_vm1, %v229_v38 }
 0x1e5   : > { %v404_v40 = vpop.f32.mrf.mxu2 }
 0x1e6   : > { %v405_v41 = vadd.f32 %v404_v40, %v382_v39 }
 0x1e8   : > { %407 = vst [vmem:[%s224_s25] sm:$0xff] %v405_v41 }
 0x1e9 PF: > { %s15_s18 = sadd.s32 1, %s526_s18  }
 0x1ea   : > { %p12_p5 = scmp.ge.s32.totalorder %s15_s18, 5  }
 0x1ec   :  { %14 = sbr.rel (!%p12_p5) target bundleno = 1 (0x1), region = 70 }

</bundles_post_ra>
